<compile_context>
chip_gen: v7x
topology: tpu7x:2x2x1
jax: 0.10.0
libtpu: 0.0.40
codegen_flags: <defaults>
</compile_context>

<pallas_src>
import math

import jax
import jax.numpy as jnp
from jax.experimental import pallas as pl
from jax.experimental.pallas import tpu as pltpu

_LANES = 128
_BLOCK_ROWS = 1024          # gridded-path tile: fits v7x 32 MiB scoped VMEM easily
_GRIDLESS_MAX_ROWS = 4096   # below this, whole problem stays VMEM-resident, no grid


def _elementwise_kernel(x_ref, out_ref):
    # x_ref  : (4, R, 128) float   -- stacked inputs
    # out_ref: (6, R, 128) float   -- add, sub, mul, div, gt(0/1), lt(0/1)
    x0 = x_ref[0]
    x1 = x_ref[1]
    x2 = x_ref[2]
    x3 = x_ref[3]

    out_ref[0] = x0 + x1                                   # add
    out_ref[1] = x1 - x0                                   # subtract
    out_ref[2] = x0 * x2                                   # multiply
    out_ref[3] = x2 / (x3 + 1e-05)                         # divide (exact)
    out_ref[4] = (x0 > x1).astype(out_ref.dtype)           # greater_than mask
    out_ref[5] = (x1 < x2).astype(out_ref.dtype)           # less_than mask


@jax.jit
def _pt_module_forward_jit(x0, x1, x2, x3):
    orig_shape = x0.shape
    fdt = x0.dtype

    total = math.prod(orig_shape) if orig_shape else 1
    rows = pl.cdiv(total, _LANES)
    padded = rows * _LANES

    flats = [a.reshape(-1) for a in (x0, x1, x2, x3)]
    if padded != total:
        pad = padded - total
        # Pad denominator lanes with 1.0 so the padded region stays finite.
        pad_vals = (0.0, 0.0, 0.0, 1.0)
        flats = [jnp.concatenate([f, jnp.full((pad,), v, fdt)])
                 for f, v in zip(flats, pad_vals)]

    # One contiguous lane-dense input slab: (4, rows, 128).
    x = jnp.stack([f.reshape(rows, _LANES) for f in flats], axis=0)

    out_shape = jax.ShapeDtypeStruct((6, rows, _LANES), fdt)

    if rows <= _GRIDLESS_MAX_ROWS:
        # Whole problem is one VMEM-resident tile; no grid, no pipelining needed.
        vmem_spec = pl.BlockSpec(memory_space=pltpu.MemorySpace.VMEM)
        out = pl.pallas_call(
            _elementwise_kernel,
            out_shape=out_shape,
            in_specs=[vmem_spec],
            out_specs=vmem_spec,
        )(x)
    else:
        # Large shapes: 1-D row grid, double-buffered pipeline, megacore-parallel.
        grid = (pl.cdiv(rows, _BLOCK_ROWS),)
        out = pl.pallas_call(
            _elementwise_kernel,
            out_shape=out_shape,
            grid=grid,
            in_specs=[pl.BlockSpec((4, _BLOCK_ROWS, _LANES), lambda i: (0, i, 0))],
            out_specs=pl.BlockSpec((6, _BLOCK_ROWS, _LANES), lambda i: (0, i, 0)),
            compiler_params=pltpu.CompilerParams(
                dimension_semantics=("parallel",)),
        )(x)

    flat_out = out.reshape(6, padded)[:, :total]

    return {
        "add": flat_out[0].reshape(orig_shape),
        "subtract": flat_out[1].reshape(orig_shape),
        "multiply": flat_out[2].reshape(orig_shape),
        "divide": flat_out[3].reshape(orig_shape),
        "greater_than": (flat_out[4] > 0).reshape(orig_shape),
        "less_than": (flat_out[5] > 0).reshape(orig_shape),
    }


def pt_module_forward(inputs):
    """inputs: list/tuple of 4 arrays with identical shape & float dtype."""
    x0, x1, x2, x3 = inputs
    return _pt_module_forward_jit(x0, x1, x2, x3)


if __name__ == "__main__":
    key = jax.random.PRNGKey(0)
    k0, k1, k2, k3 = jax.random.split(key, 4)
    shape = (2, 4, 16, 16)

    x0 = jax.random.normal(k0, shape, dtype=jnp.float32)
    x1 = jax.random.normal(k1, shape, dtype=jnp.float32)
    x2 = jax.random.normal(k2, shape, dtype=jnp.float32)
    # Keep the test denominator bounded away from zero so the 1e-6 tolerance
    # check is numerically stable (kernel semantics are unchanged).
    x3 = jnp.abs(jax.random.normal(k3, shape, dtype=jnp.float32)) + 0.5
    inputs = [x0, x1, x2, x3]

    results = pt_module_forward(inputs)
    results = jax.block_until_ready(results)

    # Correctness check vs. pure-JAX reference (mirrors the PyTorch module).
    ref = {
        "add": inputs[0] + inputs[1],
        "subtract": inputs[1] - inputs[0],
        "multiply": inputs[0] * inputs[2],
        "divide": inputs[2] / (inputs[3] + 1e-05),
        "greater_than": inputs[0] > inputs[1],
        "less_than": inputs[1] < inputs[2],
    }
    for name, val in ref.items():
        got = results[name]
        assert got.shape == val.shape, f"{name}: shape {got.shape} vs {val.shape}"
        assert got.dtype == val.dtype, f"{name}: dtype {got.dtype} vs {val.dtype}"
        assert jnp.allclose(got.astype(jnp.float32), val.astype(jnp.float32),
                            rtol=1e-6, atol=1e-6), name

    print("KERNEL_OK")
</pallas_src>

<mosaic_0001>
module attributes {stable_mosaic.version = 11 : i64} {
  func.func @_elementwise_kernel(%arg0: memref<4x16x128xf32, #tpu.memory_space<vmem>>, %arg1: memref<6x16x128xf32, #tpu.memory_space<vmem>>) attributes {dimension_semantics = [], scalar_prefetch = 0 : i64, scratch_operands = 0 : i64, tpu.core_type = #tpu.core_type<tc>} {
    %c0 = arith.constant 0 : index
    %c0_0 = arith.constant 0 : index
    %c0_1 = arith.constant 0 : index
    %0 = vector.load %arg0[%c0, %c0_0, %c0_1] : memref<4x16x128xf32, #tpu.memory_space<vmem>>, vector<1x16x128xf32>
    %1 = vector.shape_cast %0 : vector<1x16x128xf32> to vector<16x128xf32>
    %c1 = arith.constant 1 : index
    %c0_2 = arith.constant 0 : index
    %c0_3 = arith.constant 0 : index
    %2 = vector.load %arg0[%c1, %c0_2, %c0_3] : memref<4x16x128xf32, #tpu.memory_space<vmem>>, vector<1x16x128xf32>
    %3 = vector.shape_cast %2 : vector<1x16x128xf32> to vector<16x128xf32>
    %c2 = arith.constant 2 : index
    %c0_4 = arith.constant 0 : index
    %c0_5 = arith.constant 0 : index
    %4 = vector.load %arg0[%c2, %c0_4, %c0_5] : memref<4x16x128xf32, #tpu.memory_space<vmem>>, vector<1x16x128xf32>
    %5 = vector.shape_cast %4 : vector<1x16x128xf32> to vector<16x128xf32>
    %c3 = arith.constant 3 : index
    %c0_6 = arith.constant 0 : index
    %c0_7 = arith.constant 0 : index
    %6 = vector.load %arg0[%c3, %c0_6, %c0_7] : memref<4x16x128xf32, #tpu.memory_space<vmem>>, vector<1x16x128xf32>
    %7 = vector.shape_cast %6 : vector<1x16x128xf32> to vector<16x128xf32>
    %8 = arith.addf %1, %3 : vector<16x128xf32>
    %c0_8 = arith.constant 0 : index
    %c0_9 = arith.constant 0 : index
    %c0_10 = arith.constant 0 : index
    %9 = vector.load %arg1[%c0_8, %c0_9, %c0_10] : memref<6x16x128xf32, #tpu.memory_space<vmem>>, vector<1x16x128xf32>
    %10 = vector.shape_cast %9 : vector<1x16x128xf32> to vector<16x128xf32>
    %11 = vector.shape_cast %8 : vector<16x128xf32> to vector<1x16x128xf32>
    tpu.vector_store %arg1[%c0_8, %c0_9, %c0_10], %11 {strides = array<i32>} : memref<6x16x128xf32, #tpu.memory_space<vmem>>, vector<1x16x128xf32>,
    %12 = arith.subf %3, %1 : vector<16x128xf32>
    %c1_11 = arith.constant 1 : index
    %c0_12 = arith.constant 0 : index
    %c0_13 = arith.constant 0 : index
    %13 = vector.load %arg1[%c1_11, %c0_12, %c0_13] : memref<6x16x128xf32, #tpu.memory_space<vmem>>, vector<1x16x128xf32>
    %14 = vector.shape_cast %13 : vector<1x16x128xf32> to vector<16x128xf32>
    %15 = vector.shape_cast %12 : vector<16x128xf32> to vector<1x16x128xf32>
    tpu.vector_store %arg1[%c1_11, %c0_12, %c0_13], %15 {strides = array<i32>} : memref<6x16x128xf32, #tpu.memory_space<vmem>>, vector<1x16x128xf32>,
    %16 = arith.mulf %1, %5 : vector<16x128xf32>
    %c2_14 = arith.constant 2 : index
    %c0_15 = arith.constant 0 : index
    %c0_16 = arith.constant 0 : index
    %17 = vector.load %arg1[%c2_14, %c0_15, %c0_16] : memref<6x16x128xf32, #tpu.memory_space<vmem>>, vector<1x16x128xf32>
    %18 = vector.shape_cast %17 : vector<1x16x128xf32> to vector<16x128xf32>
    %19 = vector.shape_cast %16 : vector<16x128xf32> to vector<1x16x128xf32>
    tpu.vector_store %arg1[%c2_14, %c0_15, %c0_16], %19 {strides = array<i32>} : memref<6x16x128xf32, #tpu.memory_space<vmem>>, vector<1x16x128xf32>,
    %cst = arith.constant 9.99999974E-6 : f32
    %20 = vector.broadcast %cst : f32 to vector<16x128xf32>
    %21 = arith.addf %7, %20 : vector<16x128xf32>
    %22 = arith.divf %5, %21 : vector<16x128xf32>
    %c3_17 = arith.constant 3 : index
    %c0_18 = arith.constant 0 : index
    %c0_19 = arith.constant 0 : index
    %23 = vector.load %arg1[%c3_17, %c0_18, %c0_19] : memref<6x16x128xf32, #tpu.memory_space<vmem>>, vector<1x16x128xf32>
    %24 = vector.shape_cast %23 : vector<1x16x128xf32> to vector<16x128xf32>
    %25 = vector.shape_cast %22 : vector<16x128xf32> to vector<1x16x128xf32>
    tpu.vector_store %arg1[%c3_17, %c0_18, %c0_19], %25 {strides = array<i32>} : memref<6x16x128xf32, #tpu.memory_space<vmem>>, vector<1x16x128xf32>,
    %26 = arith.cmpf ogt, %1, %3 : vector<16x128xf32>
    %27 = arith.extui %26 : vector<16x128xi1> to vector<16x128xi32>
    %28 = arith.sitofp %27 : vector<16x128xi32> to vector<16x128xf32>
    %c4 = arith.constant 4 : index
    %c0_20 = arith.constant 0 : index
    %c0_21 = arith.constant 0 : index
    %29 = vector.load %arg1[%c4, %c0_20, %c0_21] : memref<6x16x128xf32, #tpu.memory_space<vmem>>, vector<1x16x128xf32>
    %30 = vector.shape_cast %29 : vector<1x16x128xf32> to vector<16x128xf32>
    %31 = vector.shape_cast %28 : vector<16x128xf32> to vector<1x16x128xf32>
    tpu.vector_store %arg1[%c4, %c0_20, %c0_21], %31 {strides = array<i32>} : memref<6x16x128xf32, #tpu.memory_space<vmem>>, vector<1x16x128xf32>,
    %32 = arith.cmpf olt, %3, %5 : vector<16x128xf32>
    %33 = arith.extui %32 : vector<16x128xi1> to vector<16x128xi32>
    %34 = arith.sitofp %33 : vector<16x128xi32> to vector<16x128xf32>
    %c5 = arith.constant 5 : index
    %c0_22 = arith.constant 0 : index
    %c0_23 = arith.constant 0 : index
    %35 = vector.load %arg1[%c5, %c0_22, %c0_23] : memref<6x16x128xf32, #tpu.memory_space<vmem>>, vector<1x16x128xf32>
    %36 = vector.shape_cast %35 : vector<1x16x128xf32> to vector<16x128xf32>
    %37 = vector.shape_cast %34 : vector<16x128xf32> to vector<1x16x128xf32>
    tpu.vector_store %arg1[%c5, %c0_22, %c0_23], %37 {strides = array<i32>} : memref<6x16x128xf32, #tpu.memory_space<vmem>>, vector<1x16x128xf32>,
    return
  }
}

</mosaic_0001>

<bundles_post_ra>
// kernel: squeeze.6
= control target key start
LH: loop header
LB: loop body
LE: loop exit
PB: predicated region body
PF: predicated region fallthrough
CT: control target
= control target key end

     0   :  { %vm4_vm0 = vcmask 130048   ;;  %s184_s10 = smov 112   ;;  %s251_s0 = inlined_call_operand.vmem [shape: f32[1,16,128], index: 0, kind: input, shape index: {}]   ;;  %s252_s1 = inlined_call_operand.hbm [shape: f32[2,4,16,16], index: 1, kind: output, shape index: {}]  }
   0x1   :  { %v31_v0 = vld [vmem:[%s251_s0] sm:$0xff]   ;;  %v145_v1 = vld [vmem:[%s251_s0 + $0x8] sm:$0xff]   ;;  %s183_s0 = smov 96  }
   0x2   :  { %32 = vrot.lane.b32.xlu1 %v31_v0, %s183_s0  ;;  %15 = vrot.lane.b32.xlu0 %v31_v0, %s184_s10 }
   0x3   :  { %2 = vsyncpa [#allocation1], 0  ;;  %5 = vst.msk [vmem:[#allocation0] ss:$8 sm:$0xf] %vm4_vm0, %v31_v0   ;;  %s185_s11 = smov 80  }
   0x4   :  { %6 = vst.msk [vmem:[#allocation0] ss:$8 sm:$0xf0] %vm4_vm0, %v31_v0   ;;  %11 = vst.msk [vmem:[#allocation0 + $0x40] ss:$8 sm:$0xf] %vm4_vm0, %v145_v1  }
   0x5   :  { %13 = vst.msk [vmem:[#allocation0 + $0x40] ss:$8 sm:$0xf0] %vm4_vm0, %v145_v1   ;;  %s186_s12 = smov 64   ;;  %s187_s13 = smov 48  }
   0x6   :  { %41 = vrot.lane.b32.xlu1 %v145_v1, %s183_s0  ;;  %24 = vrot.lane.b32.xlu0 %v145_v1, %s184_s10  ;;  %s188_s14 = smov 32   ;;  %s189_s15 = smov 16  }
   0x7   :  { %s190_s16 = smov [#allocation0]  }
   0x8   :  { %s137_s17 = sshll.u32 %s190_s16, 4  ;;  %s138_s17 = int_to_ptr.vmem [resolvable:$true] %s137_s17 }
   0x9   :  { %s159_s18 = scalar_lea.vmem %s138_s17, 2048  ;;  %p164_p1 = scmp.lt.s32.totalorder %s138_s17, %s138_s17 }
   0xa   :  { %58 = vrot.lane.b32.xlu1 %v145_v1, %s185_s11  ;;  %49 = vrot.lane.b32.xlu0 %v31_v0, %s185_s11  ;;  %p160_p0 = scmp.ne.s32.totalorder %s138_s17, %s159_s18  ;;  %p165_p2 = scmp.lt.s32.totalorder %s159_s18, %s159_s18 }
   0xc   :  { %p166_p3 = por %p165_p2, %p164_p1 }
   0xe   :  { %75 = vrot.lane.b32.xlu1 %v145_v1, %s186_s12  ;;  %66 = vrot.lane.b32.xlu0 %v31_v0, %s186_s12  ;;  %p167_p4 = pnand %p166_p3, %p160_p0 }
  0x12   :  { %92 = vrot.lane.b32.xlu1 %v145_v1, %s187_s13  ;;  %83 = vrot.lane.b32.xlu0 %v31_v0, %s187_s13 }
  0x16   :  { %109 = vrot.lane.b32.xlu1 %v145_v1, %s188_s14  ;;  %100 = vrot.lane.b32.xlu0 %v31_v0, %s188_s14 }
  0x1a   :  { %126 = vrot.lane.b32.xlu1 %v145_v1, %s189_s15  ;;  %117 = vrot.lane.b32.xlu0 %v31_v0, %s189_s15 }
  0x74   :  { %v33_v2 = vpop.permute.xlu1 %32   ;;  %v16_v3 = vpop.permute.xlu0 %15  }
  0x75   :  { %36 = vst.msk [vmem:[#allocation0 + $0x2] ss:$8 sm:$0xf] %vm4_vm0, %v33_v2   ;;  %38 = vst.msk [vmem:[#allocation0 + $0x2] ss:$8 sm:$0xf0] %vm4_vm0, %v33_v2  }
  0x76   :  { %19 = vst.msk [vmem:[#allocation0 + $0x1] ss:$8 sm:$0xf] %vm4_vm0, %v16_v3   ;;  %21 = vst.msk [vmem:[#allocation0 + $0x1] ss:$8 sm:$0xf0] %vm4_vm0, %v16_v3  }
  0x78   :  { %v42_v4 = vpop.permute.xlu1 %41   ;;  %v25_v5 = vpop.permute.xlu0 %24  }
  0x79   :  { %45 = vst.msk [vmem:[#allocation0 + $0x42] ss:$8 sm:$0xf] %vm4_vm0, %v42_v4   ;;  %47 = vst.msk [vmem:[#allocation0 + $0x42] ss:$8 sm:$0xf0] %vm4_vm0, %v42_v4  }
  0x7a   :  { %28 = vst.msk [vmem:[#allocation0 + $0x41] ss:$8 sm:$0xf] %vm4_vm0, %v25_v5   ;;  %30 = vst.msk [vmem:[#allocation0 + $0x41] ss:$8 sm:$0xf0] %vm4_vm0, %v25_v5  }
  0x7c   :  { %v59_v6 = vpop.permute.xlu1 %58   ;;  %v50_v7 = vpop.permute.xlu0 %49  }
  0x7d   :  { %62 = vst.msk [vmem:[#allocation0 + $0x43] ss:$8 sm:$0xf] %vm4_vm0, %v59_v6   ;;  %64 = vst.msk [vmem:[#allocation0 + $0x43] ss:$8 sm:$0xf0] %vm4_vm0, %v59_v6  }
  0x7e   :  { %53 = vst.msk [vmem:[#allocation0 + $0x3] ss:$8 sm:$0xf] %vm4_vm0, %v50_v7   ;;  %55 = vst.msk [vmem:[#allocation0 + $0x3] ss:$8 sm:$0xf0] %vm4_vm0, %v50_v7  }
  0x80   :  { %v76_v8 = vpop.permute.xlu1 %75   ;;  %v67_v9 = vpop.permute.xlu0 %66  }
  0x81   :  { %79 = vst.msk [vmem:[#allocation0 + $0x44] ss:$8 sm:$0xf] %vm4_vm0, %v76_v8   ;;  %81 = vst.msk [vmem:[#allocation0 + $0x44] ss:$8 sm:$0xf0] %vm4_vm0, %v76_v8  }
  0x82   :  { %70 = vst.msk [vmem:[#allocation0 + $0x4] ss:$8 sm:$0xf] %vm4_vm0, %v67_v9   ;;  %72 = vst.msk [vmem:[#allocation0 + $0x4] ss:$8 sm:$0xf0] %vm4_vm0, %v67_v9  }
  0x84   :  { %v93_v10 = vpop.permute.xlu1 %92   ;;  %v84_v11 = vpop.permute.xlu0 %83  }
  0x85   :  { %96 = vst.msk [vmem:[#allocation0 + $0x45] ss:$8 sm:$0xf] %vm4_vm0, %v93_v10   ;;  %98 = vst.msk [vmem:[#allocation0 + $0x45] ss:$8 sm:$0xf0] %vm4_vm0, %v93_v10  }
  0x86   :  { %87 = vst.msk [vmem:[#allocation0 + $0x5] ss:$8 sm:$0xf] %vm4_vm0, %v84_v11   ;;  %89 = vst.msk [vmem:[#allocation0 + $0x5] ss:$8 sm:$0xf0] %vm4_vm0, %v84_v11  }
  0x88   :  { %v110_v12 = vpop.permute.xlu1 %109   ;;  %v101_v13 = vpop.permute.xlu0 %100  }
  0x89   :  { %113 = vst.msk [vmem:[#allocation0 + $0x46] ss:$8 sm:$0xf] %vm4_vm0, %v110_v12   ;;  %115 = vst.msk [vmem:[#allocation0 + $0x46] ss:$8 sm:$0xf0] %vm4_vm0, %v110_v12  }
  0x8a   :  { %104 = vst.msk [vmem:[#allocation0 + $0x6] ss:$8 sm:$0xf] %vm4_vm0, %v101_v13   ;;  %106 = vst.msk [vmem:[#allocation0 + $0x6] ss:$8 sm:$0xf0] %vm4_vm0, %v101_v13  }
  0x8c   :  { %v127_v14 = vpop.permute.xlu1 %126   ;;  %v118_v15 = vpop.permute.xlu0 %117  }
  0x8d   :  { %130 = vst.msk [vmem:[#allocation0 + $0x47] ss:$8 sm:$0xf] %vm4_vm0, %v127_v14   ;;  %132 = vst.msk [vmem:[#allocation0 + $0x47] ss:$8 sm:$0xf0] %vm4_vm0, %v127_v14  }
  0x8e   :  { %121 = vst.msk [vmem:[#allocation0 + $0x7] ss:$8 sm:$0xf] %vm4_vm0, %v118_v15   ;;  %123 = vst.msk [vmem:[#allocation0 + $0x7] ss:$8 sm:$0xf0] %vm4_vm0, %v118_v15  }
  0x8f   :  { %170 = shalt.err (!%p167_p4)
}
  0x90   :  { %s171_s21 = scalar_lea.hbm %s252_s1, 2048 }
  0x91   :  { %p172_p5 = scmp.ne.s32.totalorder %s252_s1, %s171_s21  ;;  %p175_p6 = scmp.lt.u32.totalorder %s171_s21, %s252_s1 }
  0x93   :  { %p177_p7 = pnand %p175_p6, %p172_p5 }
  0x95   :  { %180 = shalt.err (!%p177_p7)
}
  0x96   :  { %140 = dma.vmem_to_hbm [thread:$0]  %s138_s17, 2048, %s252_s1, [#allocation1]  }
  0x97   :  { %181 = dma.done.wait [#allocation1], 2048  }
  0x98   :  { %182 = vsyncadd [#allocation1], 4294965248 }
  0x99   :  { %142 = vsyncpa [#allocation1], 1 }

// kernel: squeeze.7
= control target key start
LH: loop header
LB: loop body
LE: loop exit
PB: predicated region body
PF: predicated region fallthrough
CT: control target
= control target key end

     0   :  { %vm4_vm0 = vcmask 130048   ;;  %s184_s10 = smov 112   ;;  %s251_s0 = inlined_call_operand.vmem [shape: f32[2048], index: 0, kind: input, shape index: {}]   ;;  %s252_s1 = inlined_call_operand.hbm [shape: f32[2,4,16,16], index: 1, kind: output, shape index: {}]  }
   0x1   :  { %v31_v0 = vld [vmem:[%s251_s0] sm:$0xff]   ;;  %v145_v1 = vld [vmem:[%s251_s0 + $0x8] sm:$0xff]   ;;  %s183_s0 = smov 96  }
   0x2   :  { %32 = vrot.lane.b32.xlu1 %v31_v0, %s183_s0  ;;  %15 = vrot.lane.b32.xlu0 %v31_v0, %s184_s10 }
   0x3   :  { %2 = vsyncpa [#allocation1], 0  ;;  %5 = vst.msk [vmem:[#allocation0] ss:$8 sm:$0xf] %vm4_vm0, %v31_v0   ;;  %s185_s11 = smov 80  }
   0x4   :  { %6 = vst.msk [vmem:[#allocation0] ss:$8 sm:$0xf0] %vm4_vm0, %v31_v0   ;;  %11 = vst.msk [vmem:[#allocation0 + $0x40] ss:$8 sm:$0xf] %vm4_vm0, %v145_v1  }
   0x5   :  { %13 = vst.msk [vmem:[#allocation0 + $0x40] ss:$8 sm:$0xf0] %vm4_vm0, %v145_v1   ;;  %s186_s12 = smov 64   ;;  %s187_s13 = smov 48  }
   0x6   :  { %41 = vrot.lane.b32.xlu1 %v145_v1, %s183_s0  ;;  %24 = vrot.lane.b32.xlu0 %v145_v1, %s184_s10  ;;  %s188_s14 = smov 32   ;;  %s189_s15 = smov 16  }
   0x7   :  { %s190_s16 = smov [#allocation0]  }
   0x8   :  { %s137_s17 = sshll.u32 %s190_s16, 4  ;;  %s138_s17 = int_to_ptr.vmem [resolvable:$true] %s137_s17 }
   0x9   :  { %s159_s18 = scalar_lea.vmem %s138_s17, 2048  ;;  %p164_p1 = scmp.lt.s32.totalorder %s138_s17, %s138_s17 }
   0xa   :  { %58 = vrot.lane.b32.xlu1 %v145_v1, %s185_s11  ;;  %49 = vrot.lane.b32.xlu0 %v31_v0, %s185_s11  ;;  %p160_p0 = scmp.ne.s32.totalorder %s138_s17, %s159_s18  ;;  %p165_p2 = scmp.lt.s32.totalorder %s159_s18, %s159_s18 }
   0xc   :  { %p166_p3 = por %p165_p2, %p164_p1 }
   0xe   :  { %75 = vrot.lane.b32.xlu1 %v145_v1, %s186_s12  ;;  %66 = vrot.lane.b32.xlu0 %v31_v0, %s186_s12  ;;  %p167_p4 = pnand %p166_p3, %p160_p0 }
  0x12   :  { %92 = vrot.lane.b32.xlu1 %v145_v1, %s187_s13  ;;  %83 = vrot.lane.b32.xlu0 %v31_v0, %s187_s13 }
  0x16   :  { %109 = vrot.lane.b32.xlu1 %v145_v1, %s188_s14  ;;  %100 = vrot.lane.b32.xlu0 %v31_v0, %s188_s14 }
  0x1a   :  { %126 = vrot.lane.b32.xlu1 %v145_v1, %s189_s15  ;;  %117 = vrot.lane.b32.xlu0 %v31_v0, %s189_s15 }
  0x74   :  { %v33_v2 = vpop.permute.xlu1 %32   ;;  %v16_v3 = vpop.permute.xlu0 %15  }
  0x75   :  { %36 = vst.msk [vmem:[#allocation0 + $0x2] ss:$8 sm:$0xf] %vm4_vm0, %v33_v2   ;;  %38 = vst.msk [vmem:[#allocation0 + $0x2] ss:$8 sm:$0xf0] %vm4_vm0, %v33_v2  }
  0x76   :  { %19 = vst.msk [vmem:[#allocation0 + $0x1] ss:$8 sm:$0xf] %vm4_vm0, %v16_v3   ;;  %21 = vst.msk [vmem:[#allocation0 + $0x1] ss:$8 sm:$0xf0] %vm4_vm0, %v16_v3  }
  0x78   :  { %v42_v4 = vpop.permute.xlu1 %41   ;;  %v25_v5 = vpop.permute.xlu0 %24  }
  0x79   :  { %45 = vst.msk [vmem:[#allocation0 + $0x42] ss:$8 sm:$0xf] %vm4_vm0, %v42_v4   ;;  %47 = vst.msk [vmem:[#allocation0 + $0x42] ss:$8 sm:$0xf0] %vm4_vm0, %v42_v4  }
  0x7a   :  { %28 = vst.msk [vmem:[#allocation0 + $0x41] ss:$8 sm:$0xf] %vm4_vm0, %v25_v5   ;;  %30 = vst.msk [vmem:[#allocation0 + $0x41] ss:$8 sm:$0xf0] %vm4_vm0, %v25_v5  }
  0x7c   :  { %v59_v6 = vpop.permute.xlu1 %58   ;;  %v50_v7 = vpop.permute.xlu0 %49  }
  0x7d   :  { %62 = vst.msk [vmem:[#allocation0 + $0x43] ss:$8 sm:$0xf] %vm4_vm0, %v59_v6   ;;  %64 = vst.msk [vmem:[#allocation0 + $0x43] ss:$8 sm:$0xf0] %vm4_vm0, %v59_v6  }
  0x7e   :  { %53 = vst.msk [vmem:[#allocation0 + $0x3] ss:$8 sm:$0xf] %vm4_vm0, %v50_v7   ;;  %55 = vst.msk [vmem:[#allocation0 + $0x3] ss:$8 sm:$0xf0] %vm4_vm0, %v50_v7  }
  0x80   :  { %v76_v8 = vpop.permute.xlu1 %75   ;;  %v67_v9 = vpop.permute.xlu0 %66  }
  0x81   :  { %79 = vst.msk [vmem:[#allocation0 + $0x44] ss:$8 sm:$0xf] %vm4_vm0, %v76_v8   ;;  %81 = vst.msk [vmem:[#allocation0 + $0x44] ss:$8 sm:$0xf0] %vm4_vm0, %v76_v8  }
  0x82   :  { %70 = vst.msk [vmem:[#allocation0 + $0x4] ss:$8 sm:$0xf] %vm4_vm0, %v67_v9   ;;  %72 = vst.msk [vmem:[#allocation0 + $0x4] ss:$8 sm:$0xf0] %vm4_vm0, %v67_v9  }
  0x84   :  { %v93_v10 = vpop.permute.xlu1 %92   ;;  %v84_v11 = vpop.permute.xlu0 %83  }
  0x85   :  { %96 = vst.msk [vmem:[#allocation0 + $0x45] ss:$8 sm:$0xf] %vm4_vm0, %v93_v10   ;;  %98 = vst.msk [vmem:[#allocation0 + $0x45] ss:$8 sm:$0xf0] %vm4_vm0, %v93_v10  }
  0x86   :  { %87 = vst.msk [vmem:[#allocation0 + $0x5] ss:$8 sm:$0xf] %vm4_vm0, %v84_v11   ;;  %89 = vst.msk [vmem:[#allocation0 + $0x5] ss:$8 sm:$0xf0] %vm4_vm0, %v84_v11  }
  0x88   :  { %v110_v12 = vpop.permute.xlu1 %109   ;;  %v101_v13 = vpop.permute.xlu0 %100  }
  0x89   :  { %113 = vst.msk [vmem:[#allocation0 + $0x46] ss:$8 sm:$0xf] %vm4_vm0, %v110_v12   ;;  %115 = vst.msk [vmem:[#allocation0 + $0x46] ss:$8 sm:$0xf0] %vm4_vm0, %v110_v12  }
  0x8a   :  { %104 = vst.msk [vmem:[#allocation0 + $0x6] ss:$8 sm:$0xf] %vm4_vm0, %v101_v13   ;;  %106 = vst.msk [vmem:[#allocation0 + $0x6] ss:$8 sm:$0xf0] %vm4_vm0, %v101_v13  }
  0x8c   :  { %v127_v14 = vpop.permute.xlu1 %126   ;;  %v118_v15 = vpop.permute.xlu0 %117  }
  0x8d   :  { %130 = vst.msk [vmem:[#allocation0 + $0x47] ss:$8 sm:$0xf] %vm4_vm0, %v127_v14   ;;  %132 = vst.msk [vmem:[#allocation0 + $0x47] ss:$8 sm:$0xf0] %vm4_vm0, %v127_v14  }
  0x8e   :  { %121 = vst.msk [vmem:[#allocation0 + $0x7] ss:$8 sm:$0xf] %vm4_vm0, %v118_v15   ;;  %123 = vst.msk [vmem:[#allocation0 + $0x7] ss:$8 sm:$0xf0] %vm4_vm0, %v118_v15  }
  0x8f   :  { %170 = shalt.err (!%p167_p4)
}
  0x90   :  { %s171_s21 = scalar_lea.hbm %s252_s1, 2048 }
  0x91   :  { %p172_p5 = scmp.ne.s32.totalorder %s252_s1, %s171_s21  ;;  %p175_p6 = scmp.lt.u32.totalorder %s171_s21, %s252_s1 }
  0x93   :  { %p177_p7 = pnand %p175_p6, %p172_p5 }
  0x95   :  { %180 = shalt.err (!%p177_p7)
}
  0x96   :  { %140 = dma.vmem_to_hbm [thread:$0]  %s138_s17, 2048, %s252_s1, [#allocation1]  }
  0x97   :  { %181 = dma.done.wait [#allocation1], 2048  }
  0x98   :  { %182 = vsyncadd [#allocation1], 4294965248 }
  0x99   :  { %142 = vsyncpa [#allocation1], 1 }

// kernel: _pt_module_forward_jit.1
= control target key start
LH: loop header
LB: loop body
LE: loop exit
PB: predicated region body
PF: predicated region fallthrough
CT: control target
= control target key end

     0   :  { %v89_v16 = vmov 0.0   ;;  %s160_s0 = inlined_call_operand.vmem [shape: f32[4,16,128], index: 0, kind: input, shape index: {}]   ;;  %s161_s1 = inlined_call_operand.vmem [shape: f32[6,16,128], index: 1, kind: output, shape index: {}]  }
   0x1   :  { %v8_v0 = vld [vmem:[%s160_s0] sm:$0xff]  ;;  %v64_v1 = vld [vmem:[%s160_s0 + $0x10] sm:$0xff]  ;;  %v9_v2 = vld [vmem:[%s160_s0 + $0x8] sm:$0xff] }
   0x2   :  { %v19_v3 = vadd.f32 %v64_v1, %v8_v0  ;;  %v65_v4 = vld [vmem:[%s160_s0 + $0x18] sm:$0xff]  ;;  %v23_v5 = vsub.f32 %v64_v1, %v8_v0  ;;  %v66_v6 = vld [vmem:[%s160_s0 + $0x20] sm:$0xff]  ;;  %v67_v7 = vld [vmem:[%s160_s0 + $0x28] sm:$0xff]  ;;  %vm42_vm0 = vcmp.gt.f32.partialorder %v8_v0, %v64_v1 }
   0x3   :  { %v20_v8 = vadd.f32 %v65_v4, %v9_v2  ;;  %v24_v9 = vsub.f32 %v65_v4, %v9_v2  ;;  %v28_v10 = vmul.f32 %v66_v6, %v8_v0  ;;  %v29_v11 = vmul.f32 %v67_v7, %v9_v2  ;;  %v68_v12 = vld [vmem:[%s160_s0 + $0x30] sm:$0xff]  ;;  %v69_v13 = vld [vmem:[%s160_s0 + $0x38] sm:$0xff] }
   0x4   :  { %21 = vst [vmem:[%s161_s1] sm:$0xff] %v19_v3  ;;  %70 = vst [vmem:[%s161_s1 + $0x10] sm:$0xff] %v23_v5  ;;  %v33_v14 = vadd.f32 1e-05, %v68_v12  ;;  %v34_v15 = vadd.f32 1e-05, %v69_v13  ;;  %v76_v17 = vsel %vm42_vm0, 1.0, %v89_v16  ;;  %vm43_vm1 = vcmp.gt.f32.partialorder %v9_v2, %v65_v4 }
   0x5   :  { %22 = vst [vmem:[%s161_s1 + $0x8] sm:$0xff] %v20_v8  ;;  %71 = vst [vmem:[%s161_s1 + $0x18] sm:$0xff] %v24_v9  ;;  %v77_v18 = vsel %vm43_vm1, 1.0, %v89_v16  ;;  %vm51_vm2 = vcmp.lt.f32.partialorder %v64_v1, %v66_v6  ;;  %vm52_vm3 = vcmp.lt.f32.partialorder %v65_v4, %v67_v7 }
   0x6   :  { %72 = vst [vmem:[%s161_s1 + $0x20] sm:$0xff] %v28_v10  ;;  %73 = vst [vmem:[%s161_s1 + $0x28] sm:$0xff] %v29_v11  ;;  %85 = vrcp.f32 %v33_v14  ;;  %v80_v19 = vsel %vm51_vm2, 1.0, %v89_v16  ;;  %v81_v20 = vsel %vm52_vm3, 1.0, %v89_v16 }
   0x7   :  { %78 = vst [vmem:[%s161_s1 + $0x40] sm:$0xff] %v76_v17  ;;  %79 = vst [vmem:[%s161_s1 + $0x48] sm:$0xff] %v77_v18  ;;  %87 = vrcp.f32 %v34_v15 }
   0x8   :  { %82 = vst [vmem:[%s161_s1 + $0x50] sm:$0xff] %v80_v19  ;;  %83 = vst [vmem:[%s161_s1 + $0x58] sm:$0xff] %v81_v20 }
  0x10   :  { %v86_v21 = vpop.eup %85 }
  0x11   :  { %v88_v22 = vpop.eup %87  ;;  %v36_v23 = vmul.f32 %v86_v21, %v66_v6 }
  0x12   :  { %v38_v24 = vmul.f32 %v88_v22, %v67_v7 }
  0x13   :  { %74 = vst [vmem:[%s161_s1 + $0x30] sm:$0xff] %v36_v23 }
  0x14   :  { %75 = vst [vmem:[%s161_s1 + $0x38] sm:$0xff] %v38_v24 }

</bundles_post_ra>
